<compile_context>
chip_gen: v7x
topology: tpu7x:2x2x1
jax: 0.10.0
libtpu: 0.0.40
codegen_flags: <defaults>
</compile_context>

<pallas_src>
import functools

import jax
import jax.numpy as jnp
from jax.experimental import pallas as pl
from jax.experimental.pallas import tpu as pltpu

EPS = 1e-5

# Double-buffered (x block + y block) byte budget per pipeline step.  8 MiB is
# safe inside every generation's default scoped VMEM (16 MiB v5e, 32 MiB
# v6e/v7x) with headroom for weights, so no vmem_limit_bytes override needed.
_TILE_VMEM_BUDGET = 8 * 1024 * 1024
# Whole-activation (x + y + h scratch, x2 safety) budget for the fused path.
_FUSED_VMEM_BUDGET = 12 * 1024 * 1024
# Channel count from which bf16 MXU operands are worth it.
_BF16_CHANNEL_THRESHOLD = 256


def _round_up(x, m):
    return (x + m - 1) // m * m


def _choose_pixel_tile(hwp, cin, cout, n, budget_bytes):
    """Largest multiple-of-128 pixel tile that divides the padded pixel count
    and keeps the double-buffered in+out blocks within `budget_bytes`."""
    n128 = hwp // 128
    bytes_per_128 = 2 * (cin + cout) * 4 * 128   # 2 bufs x (x + y block), f32
    max_tiles = max(1, budget_bytes // bytes_per_128)
    if n == 1:
        # Keep at least two pixel steps so the pipeline (and, on v7x, the
        # split-reduction's second TensorCore) has work to overlap.
        max_tiles = min(max_tiles, max(1, n128 // 2))
    best = 1
    for d in range(1, n128 + 1):
        if n128 % d == 0 and d <= max_tiles:
            best = d
    return best * 128


def _stats_kernel(x_ref, w1t_ref, b1_ref, sum_ref, sumsq_ref, *,
                  hw, tp, n_j, need_mask, compute_dtype):
    # x_ref: (Cin, TP)  w1t_ref: (Cout, Cin)  b1/sum/sumsq: (Cout, 1)
    @pl.when(pl.program_id(2) == 0)
    def _():
        sum_ref[...] = jnp.zeros_like(sum_ref)
        sumsq_ref[...] = jnp.zeros_like(sumsq_ref)

    x = x_ref[...].astype(compute_dtype)
    w = w1t_ref[...].astype(compute_dtype)
    h = jnp.dot(w, x, preferred_element_type=jnp.float32) + b1_ref[...]
    if need_mask:
        start = (pl.program_id(1) * n_j + pl.program_id(2)) * tp
        pix = jax.lax.broadcasted_iota(jnp.int32, h.shape, 1) + start
        h = jnp.where(pix < hw, h, 0.0)
    # TODO(synk): E[h^2]-E[h]^2 in f32; move to shifted/centered sums if
    # |mean| >> std ever becomes a concern.
    sum_ref[...] += jnp.sum(h, axis=1, keepdims=True)
    sumsq_ref[...] += jnp.sum(h * h, axis=1, keepdims=True)


def _apply_kernel(x_ref, wc_ref, c_ref, o_ref, *, compute_dtype):
    # Fused (conv1*BN-scale + shortcut) matmul + folded bias/shift + ReLU.
    x = x_ref[...].astype(compute_dtype)
    w = wc_ref[...].astype(compute_dtype)
    y = jnp.dot(w, x, preferred_element_type=jnp.float32) + c_ref[...]
    o_ref[...] = jnp.maximum(y, 0.0).astype(o_ref.dtype)


def _fused_kernel(x_ref, w1t_ref, b1_ref, gamma_ref, beta_ref, wsct_ref,
                  bsc_ref, o_ref, h_ref, *, n, hw, hwp, compute_dtype):
    # Whole (padded) activation resident in VMEM -> x read from HBM once.
    w1t = w1t_ref[...].astype(compute_dtype)
    wsct = wsct_ref[...].astype(compute_dtype)
    b1 = b1_ref[...]
    need_mask = hwp != hw
    cout = h_ref.shape[1]
    total = jnp.zeros((cout, 1), jnp.float32)
    total_sq = jnp.zeros((cout, 1), jnp.float32)
    for b in range(n):                       # n is small (gated) and static
        xb = x_ref[b].astype(compute_dtype)
        h = jnp.dot(w1t, xb, preferred_element_type=jnp.float32) + b1
        h_ref[b] = h
        if need_mask:
            pix = jax.lax.broadcasted_iota(jnp.int32, h.shape, 1)
            h = jnp.where(pix < hw, h, 0.0)
        total = total + jnp.sum(h, axis=1, keepdims=True)
        total_sq = total_sq + jnp.sum(h * h, axis=1, keepdims=True)
    inv_m = 1.0 / (n * hw)
    mean = total * inv_m
    var = total_sq * inv_m - mean * mean     # train-mode (biased) variance
    scale = gamma_ref[...] * jax.lax.rsqrt(var + EPS)
    shift = beta_ref[...] - scale * mean + bsc_ref[...]
    for b in range(n):
        xb = x_ref[b].astype(compute_dtype)
        s = jnp.dot(wsct, xb, preferred_element_type=jnp.float32)
        y = scale * h_ref[b] + shift + s
        o_ref[b] = jnp.maximum(y, 0.0).astype(o_ref.dtype)


def block_forward(x_nchw, params, *, allow_fused=True):
    """x_nchw: (N, Cin, H, W) f32 -> relu(BN(conv1x1(x)) + proj1x1(x))."""
    w1, b1, gamma, beta, wsc, bsc = params
    n, cin, hh, ww = x_nchw.shape
    cout = w1.shape[1]
    hw = hh * ww
    compute_dtype = (jnp.bfloat16
                     if min(cin, cout) >= _BF16_CHANNEL_THRESHOLD
                     else jnp.float32)

    # Channels on sublanes, pixels on lanes; pad pixels to a multiple of 128.
    hwp = _round_up(hw, 128)
    x3d = x_nchw.reshape(n, cin, hw)
    if hwp != hw:
        x3d = jnp.pad(x3d, ((0, 0), (0, 0), (0, hwp - hw)))

    w1t = jnp.transpose(w1)            # (Cout, Cin)
    wsct = jnp.transpose(wsc)          # (Cout, Cin)
    b1_2d = b1.reshape(cout, 1)
    gamma_2d = gamma.reshape(cout, 1)
    beta_2d = beta.reshape(cout, 1)
    bsc_2d = bsc.reshape(cout, 1)

    matmul_flops = 2 * n * hwp * cin * cout
    x_bytes = n * cin * hwp * 4
    y_bytes = n * cout * hwp * 4
    w_bytes = 2 * cin * cout * 4 + 4 * cout * 4

    # ---- fused single-pass fast path: whole activation resident in VMEM ----
    fused_vmem = x_bytes + 2 * y_bytes + w_bytes
    if allow_fused and n <= 16 and 2 * fused_vmem <= _FUSED_VMEM_BUDGET:
        y3d = pl.pallas_call(
            functools.partial(_fused_kernel, n=n, hw=hw, hwp=hwp,
                              compute_dtype=compute_dtype),
            out_shape=jax.ShapeDtypeStruct((n, cout, hwp), jnp.float32),
            grid=(1,),
            in_specs=[
                pl.BlockSpec((n, cin, hwp), lambda i: (0, 0, 0)),
                pl.BlockSpec((cout, cin), lambda i: (0, 0)),
                pl.BlockSpec((cout, 1), lambda i: (0, 0)),
                pl.BlockSpec((cout, 1), lambda i: (0, 0)),
                pl.BlockSpec((cout, 1), lambda i: (0, 0)),
                pl.BlockSpec((cout, cin), lambda i: (0, 0)),
                pl.BlockSpec((cout, 1), lambda i: (0, 0)),
            ],
            out_specs=pl.BlockSpec((n, cout, hwp), lambda i: (0, 0, 0)),
            scratch_shapes=[pltpu.VMEM((n, cout, hwp), jnp.float32)],
            compiler_params=pltpu.CompilerParams(
                dimension_semantics=("arbitrary",)),
            cost_estimate=pl.CostEstimate(
                flops=3 * matmul_flops, transcendentals=0,
                bytes_accessed=x_bytes + y_bytes + w_bytes),
        )(x3d, w1t, b1_2d, gamma_2d, beta_2d, wsct, bsc_2d)
        y3d = y3d[:, :, :hw] if hwp != hw else y3d
        return y3d.reshape(n, cout, hh, ww)

    # ---- two-pass tiled path ------------------------------------------------
    tp = _choose_pixel_tile(hwp, cin, cout, n, _TILE_VMEM_BUDGET)
    n_tiles = hwp // tp
    need_mask = hwp != hw

    # v7x megacore: with N == 1, split the pixel reduction into two partial
    # accumulators so pass 1 has a real 'parallel' axis (no-op on 1-TC chips).
    split = 2 if (n == 1 and n_tiles % 2 == 0) else 1
    n_j1 = n_tiles // split

    sum_part, sumsq_part = pl.pallas_call(
        functools.partial(_stats_kernel, hw=hw, tp=tp, n_j=n_j1,
                          need_mask=need_mask, compute_dtype=compute_dtype),
        out_shape=(jax.ShapeDtypeStruct((n * split, cout, 1), jnp.float32),
                   jax.ShapeDtypeStruct((n * split, cout, 1), jnp.float32)),
        grid=(n, split, n_j1),
        in_specs=[
            pl.BlockSpec((None, cin, tp), lambda i, s, j: (i, 0, s * n_j1 + j)),
            pl.BlockSpec((cout, cin), lambda i, s, j: (0, 0)),
            pl.BlockSpec((cout, 1), lambda i, s, j: (0, 0)),
        ],
        out_specs=(
            pl.BlockSpec((None, cout, 1), lambda i, s, j: (i * split + s, 0, 0)),
            pl.BlockSpec((None, cout, 1), lambda i, s, j: (i * split + s, 0, 0)),
        ),
        compiler_params=pltpu.CompilerParams(
            dimension_semantics=("parallel", "parallel", "arbitrary")),
        cost_estimate=pl.CostEstimate(
            flops=matmul_flops + 3 * n * hwp * cout, transcendentals=0,
            bytes_accessed=x_bytes + w_bytes + 2 * n * split * cout * 4),
    )(x3d, w1t, b1_2d)

    # ---- tiny (Cout,)-sized BN folding in the wrapper ------------------------
    inv_m = 1.0 / (n * hw)
    total = jnp.sum(sum_part, axis=0)[:, 0]          # (Cout,)
    total_sq = jnp.sum(sumsq_part, axis=0)[:, 0]     # (Cout,)
    mean = total * inv_m
    var = total_sq * inv_m - mean * mean             # train-mode (biased) variance
    scale = gamma * jax.lax.rsqrt(var + EPS)
    #   relu(scale*(W1^T x + b1 - mean) + beta + Wsc^T x + bsc)
    # = relu((W1*scale + Wsc)^T x + (scale*(b1 - mean) + beta + bsc))
    wc = jnp.transpose(w1 * scale[None, :] + wsc)    # (Cout, Cin)
    c = (scale * (b1 - mean) + beta + bsc).reshape(cout, 1)

    # ---- pass 2: fused matmul + bias/shift + ReLU, fully parallel grid -------
    y3d = pl.pallas_call(
        functools.partial(_apply_kernel, compute_dtype=compute_dtype),
        out_shape=jax.ShapeDtypeStruct((n, cout, hwp), jnp.float32),
        grid=(n, n_tiles),
        in_specs=[
            pl.BlockSpec((None, cin, tp), lambda i, j: (i, 0, j)),
            pl.BlockSpec((cout, cin), lambda i, j: (0, 0)),
            pl.BlockSpec((cout, 1), lambda i, j: (0, 0)),
        ],
        out_specs=pl.BlockSpec((None, cout, tp), lambda i, j: (i, 0, j)),
        compiler_params=pltpu.CompilerParams(
            dimension_semantics=("parallel", "parallel")),
        cost_estimate=pl.CostEstimate(
            flops=matmul_flops + 2 * n * hwp * cout, transcendentals=0,
            bytes_accessed=x_bytes + y_bytes + w_bytes),
    )(x3d, wc, c)

    y3d = y3d[:, :, :hw] if hwp != hw else y3d
    return y3d.reshape(n, cout, hh, ww)


def reference_forward(x_nchw, params):
    """Pure-JAX reference of the same semantics, for verification."""
    w1, b1, gamma, beta, wsc, bsc = params
    n, cin, hh, ww = x_nchw.shape
    cout = w1.shape[1]
    x = x_nchw.reshape(n, cin, hh * ww)
    h = jnp.einsum('io,nip->nop', w1, x) + b1[None, :, None]
    mean = h.mean(axis=(0, 2), keepdims=True)
    var = ((h - mean) ** 2).mean(axis=(0, 2), keepdims=True)
    hn = (h - mean) * jax.lax.rsqrt(var + EPS) * gamma[None, :, None] \
        + beta[None, :, None]
    s = jnp.einsum('io,nip->nop', wsc, x) + bsc[None, :, None]
    y = jnp.maximum(hn + s, 0.0)
    return y.reshape(n, cout, hh, ww)


def init_params(key, in_channels, out_channels):
    k1, k2, k3, k4 = jax.random.split(key, 4)
    w1 = jax.random.normal(k1, (in_channels, out_channels), jnp.float32) * 0.1
    b1 = jax.random.normal(k2, (out_channels,), jnp.float32) * 0.05
    gamma = jnp.ones((out_channels,), jnp.float32) \
        + 0.1 * jax.random.normal(k3, (out_channels,), jnp.float32)
    beta = 0.1 * jax.random.normal(k4, (out_channels,), jnp.float32)
    wsc = jax.random.normal(jax.random.fold_in(key, 7),
                            (in_channels, out_channels), jnp.float32) * 0.1
    bsc = jax.random.normal(jax.random.fold_in(key, 11),
                            (out_channels,), jnp.float32) * 0.05
    return (w1, b1, gamma, beta, wsc, bsc)


if __name__ == "__main__":
    key = jax.random.PRNGKey(0)
    in_channels, out_channels = 4, 8
    params = init_params(jax.random.fold_in(key, 1), in_channels, out_channels)

    # Case 1: H*W multiple of 128 (16x16), batch 2 — fused and tiled paths.
    x = jax.random.normal(jax.random.fold_in(key, 0),
                          (2, in_channels, 16, 16), jnp.float32)
    y_ref = jax.block_until_ready(reference_forward(x, params))

    y_fused = jax.block_until_ready(block_forward(x, params))
    assert y_fused.shape == (2, out_channels, 16, 16)
    assert jnp.max(jnp.abs(y_fused - y_ref)) < 5e-4, "fused path mismatch"

    y_tiled = jax.block_until_ready(block_forward(x, params, allow_fused=False))
    assert jnp.max(jnp.abs(y_tiled - y_ref)) < 5e-4, "tiled path mismatch"

    # Case 2: ragged H*W (14x14 = 196, not a multiple of 128), batch 1 —
    # exercises pixel padding, in-kernel stat masking and the N==1 reduction
    # split used for v7x megacore.
    x2 = jax.random.normal(jax.random.fold_in(key, 2),
                           (1, in_channels, 14, 14), jnp.float32)
    y2_ref = jax.block_until_ready(reference_forward(x2, params))

    y2_fused = jax.block_until_ready(block_forward(x2, params))
    assert y2_fused.shape == (1, out_channels, 14, 14)
    assert jnp.max(jnp.abs(y2_fused - y2_ref)) < 5e-4, "ragged fused mismatch"

    y2_tiled = jax.block_until_ready(block_forward(x2, params, allow_fused=False))
    assert jnp.max(jnp.abs(y2_tiled - y2_ref)) < 5e-4, "ragged tiled mismatch"

    print("KERNEL_OK")
</pallas_src>

<mosaic_0001>
module attributes {stable_mosaic.version = 11 : i64} {
  func.func @_fused_kernel(%arg0: i32, %arg1: memref<2x4x256xf32, #tpu.memory_space<vmem>>, %arg2: memref<8x4xf32, #tpu.memory_space<vmem>>, %arg3: memref<8x1xf32, #tpu.memory_space<vmem>>, %arg4: memref<8x1xf32, #tpu.memory_space<vmem>>, %arg5: memref<8x1xf32, #tpu.memory_space<vmem>>, %arg6: memref<8x4xf32, #tpu.memory_space<vmem>>, %arg7: memref<8x1xf32, #tpu.memory_space<vmem>>, %arg8: memref<2x8x256xf32, #tpu.memory_space<vmem>>, %arg9: memref<2x8x256xf32, #tpu.memory_space<vmem>>) attributes {dimension_semantics = [#tpu.dimension_semantics<arbitrary>], iteration_bounds = array<i64: 1>, scalar_prefetch = 0 : i64, scratch_operands = 1 : i64, tpu.core_type = #tpu.core_type<tc>, window_params = [{pipeline_mode = #tpu.pipeline_mode<synchronous>, transform_indices = @transform_0, window_bounds = array<i64: 2, 4, 256>}, {pipeline_mode = #tpu.pipeline_mode<synchronous>, transform_indices = @transform_1, window_bounds = array<i64: 8, 4>}, {pipeline_mode = #tpu.pipeline_mode<synchronous>, transform_indices = @transform_2, window_bounds = array<i64: 8, 1>}, {pipeline_mode = #tpu.pipeline_mode<synchronous>, transform_indices = @transform_3, window_bounds = array<i64: 8, 1>}, {pipeline_mode = #tpu.pipeline_mode<synchronous>, transform_indices = @transform_4, window_bounds = array<i64: 8, 1>}, {pipeline_mode = #tpu.pipeline_mode<synchronous>, transform_indices = @transform_5, window_bounds = array<i64: 8, 4>}, {pipeline_mode = #tpu.pipeline_mode<synchronous>, transform_indices = @transform_6, window_bounds = array<i64: 8, 1>}, {pipeline_mode = #tpu.pipeline_mode<synchronous>, transform_indices = @transform_7, window_bounds = array<i64: 2, 8, 256>}]} {
    %c0 = arith.constant 0 : index
    %c0_0 = arith.constant 0 : index
    %0 = vector.load %arg2[%c0, %c0_0] : memref<8x4xf32, #tpu.memory_space<vmem>>, vector<8x4xf32>
    %c0_1 = arith.constant 0 : index
    %c0_2 = arith.constant 0 : index
    %1 = vector.load %arg6[%c0_1, %c0_2] : memref<8x4xf32, #tpu.memory_space<vmem>>, vector<8x4xf32>
    %c0_3 = arith.constant 0 : index
    %c0_4 = arith.constant 0 : index
    %2 = vector.load %arg3[%c0_3, %c0_4] : memref<8x1xf32, #tpu.memory_space<vmem>>, vector<8x1xf32>
    %cst = arith.constant 0.000000e+00 : f32
    %3 = vector.broadcast %cst : f32 to vector<8x1xf32>
    %cst_5 = arith.constant 0.000000e+00 : f32
    %4 = vector.broadcast %cst_5 : f32 to vector<8x1xf32>
    %c0_6 = arith.constant 0 : index
    %c0_7 = arith.constant 0 : index
    %c0_8 = arith.constant 0 : index
    %5 = vector.load %arg1[%c0_6, %c0_7, %c0_8] : memref<2x4x256xf32, #tpu.memory_space<vmem>>, vector<1x4x256xf32>
    %6 = vector.shape_cast %5 : vector<1x4x256xf32> to vector<4x256xf32>
    %cst_9 = arith.constant dense<0.000000e+00> : vector<8x256xf32>
    %7 = tpu.matmul %0, %6, %cst_9 {dimension_numbers = #tpu.dot_dimension_numbers<[1], [0], [0], [1], [0, 0, 1, 1], [], []>} : vector<8x4xf32>, vector<4x256xf32>, vector<8x256xf32> -> vector<8x256xf32>
    %8 = vector.broadcast %2 : vector<8x1xf32> to vector<8x256xf32>
    %9 = arith.addf %7, %8 : vector<8x256xf32>
    %c0_10 = arith.constant 0 : index
    %c0_11 = arith.constant 0 : index
    %c0_12 = arith.constant 0 : index
    %10 = vector.load %arg9[%c0_10, %c0_11, %c0_12] : memref<2x8x256xf32, #tpu.memory_space<vmem>>, vector<1x8x256xf32>
    %11 = vector.shape_cast %10 : vector<1x8x256xf32> to vector<8x256xf32>
    %12 = vector.shape_cast %9 : vector<8x256xf32> to vector<1x8x256xf32>
    tpu.vector_store %arg9[%c0_10, %c0_11, %c0_12], %12 {strides = array<i32>} : memref<2x8x256xf32, #tpu.memory_space<vmem>>, vector<1x8x256xf32>,
    %cst_13 = arith.constant dense<0.000000e+00> : vector<8xf32>
    %13 = vector.multi_reduction <add>, %9, %cst_13 [1] : vector<8x256xf32> to vector<8xf32>
    %14 = vector.shape_cast %13 : vector<8xf32> to vector<8x1xf32>
    %15 = arith.addf %3, %14 : vector<8x1xf32>
    %16 = arith.mulf %9, %9 : vector<8x256xf32>
    %cst_14 = arith.constant dense<0.000000e+00> : vector<8xf32>
    %17 = vector.multi_reduction <add>, %16, %cst_14 [1] : vector<8x256xf32> to vector<8xf32>
    %18 = vector.shape_cast %17 : vector<8xf32> to vector<8x1xf32>
    %19 = arith.addf %4, %18 : vector<8x1xf32>
    %c1 = arith.constant 1 : index
    %c0_15 = arith.constant 0 : index
    %c0_16 = arith.constant 0 : index
    %20 = vector.load %arg1[%c1, %c0_15, %c0_16] : memref<2x4x256xf32, #tpu.memory_space<vmem>>, vector<1x4x256xf32>
    %21 = vector.shape_cast %20 : vector<1x4x256xf32> to vector<4x256xf32>
    %cst_17 = arith.constant dense<0.000000e+00> : vector<8x256xf32>
    %22 = tpu.matmul %0, %21, %cst_17 {dimension_numbers = #tpu.dot_dimension_numbers<[1], [0], [0], [1], [0, 0, 1, 1], [], []>} : vector<8x4xf32>, vector<4x256xf32>, vector<8x256xf32> -> vector<8x256xf32>
    %23 = vector.broadcast %2 : vector<8x1xf32> to vector<8x256xf32>
    %24 = arith.addf %22, %23 : vector<8x256xf32>
    %c1_18 = arith.constant 1 : index
    %c0_19 = arith.constant 0 : index
    %c0_20 = arith.constant 0 : index
    %25 = vector.load %arg9[%c1_18, %c0_19, %c0_20] : memref<2x8x256xf32, #tpu.memory_space<vmem>>, vector<1x8x256xf32>
    %26 = vector.shape_cast %25 : vector<1x8x256xf32> to vector<8x256xf32>
    %27 = vector.shape_cast %24 : vector<8x256xf32> to vector<1x8x256xf32>
    tpu.vector_store %arg9[%c1_18, %c0_19, %c0_20], %27 {strides = array<i32>} : memref<2x8x256xf32, #tpu.memory_space<vmem>>, vector<1x8x256xf32>,
    %cst_21 = arith.constant dense<0.000000e+00> : vector<8xf32>
    %28 = vector.multi_reduction <add>, %24, %cst_21 [1] : vector<8x256xf32> to vector<8xf32>
    %29 = vector.shape_cast %28 : vector<8xf32> to vector<8x1xf32>
    %30 = arith.addf %15, %29 : vector<8x1xf32>
    %31 = arith.mulf %24, %24 : vector<8x256xf32>
    %cst_22 = arith.constant dense<0.000000e+00> : vector<8xf32>
    %32 = vector.multi_reduction <add>, %31, %cst_22 [1] : vector<8x256xf32> to vector<8xf32>
    %33 = vector.shape_cast %32 : vector<8xf32> to vector<8x1xf32>
    %34 = arith.addf %19, %33 : vector<8x1xf32>
    %cst_23 = arith.constant 0.001953125 : f32
    %35 = vector.broadcast %cst_23 : f32 to vector<8x1xf32>
    %36 = arith.mulf %30, %35 : vector<8x1xf32>
    %cst_24 = arith.constant 0.001953125 : f32
    %37 = vector.broadcast %cst_24 : f32 to vector<8x1xf32>
    %38 = arith.mulf %34, %37 : vector<8x1xf32>
    %39 = arith.mulf %36, %36 : vector<8x1xf32>
    %40 = arith.subf %38, %39 : vector<8x1xf32>
    %c0_25 = arith.constant 0 : index
    %c0_26 = arith.constant 0 : index
    %41 = vector.load %arg4[%c0_25, %c0_26] : memref<8x1xf32, #tpu.memory_space<vmem>>, vector<8x1xf32>
    %cst_27 = arith.constant 9.99999974E-6 : f32
    %42 = vector.broadcast %cst_27 : f32 to vector<8x1xf32>
    %43 = arith.addf %40, %42 : vector<8x1xf32>
    %44 = math.rsqrt %43 : vector<8x1xf32>
    %45 = arith.mulf %41, %44 : vector<8x1xf32>
    %c0_28 = arith.constant 0 : index
    %c0_29 = arith.constant 0 : index
    %46 = vector.load %arg5[%c0_28, %c0_29] : memref<8x1xf32, #tpu.memory_space<vmem>>, vector<8x1xf32>
    %47 = arith.mulf %45, %36 : vector<8x1xf32>
    %48 = arith.subf %46, %47 : vector<8x1xf32>
    %c0_30 = arith.constant 0 : index
    %c0_31 = arith.constant 0 : index
    %49 = vector.load %arg7[%c0_30, %c0_31] : memref<8x1xf32, #tpu.memory_space<vmem>>, vector<8x1xf32>
    %50 = arith.addf %48, %49 : vector<8x1xf32>
    %c0_32 = arith.constant 0 : index
    %c0_33 = arith.constant 0 : index
    %c0_34 = arith.constant 0 : index
    %51 = vector.load %arg1[%c0_32, %c0_33, %c0_34] : memref<2x4x256xf32, #tpu.memory_space<vmem>>, vector<1x4x256xf32>
    %52 = vector.shape_cast %51 : vector<1x4x256xf32> to vector<4x256xf32>
    %cst_35 = arith.constant dense<0.000000e+00> : vector<8x256xf32>
    %53 = tpu.matmul %1, %52, %cst_35 {dimension_numbers = #tpu.dot_dimension_numbers<[1], [0], [0], [1], [0, 0, 1, 1], [], []>} : vector<8x4xf32>, vector<4x256xf32>, vector<8x256xf32> -> vector<8x256xf32>
    %c0_36 = arith.constant 0 : index
    %c0_37 = arith.constant 0 : index
    %c0_38 = arith.constant 0 : index
    %54 = vector.load %arg9[%c0_36, %c0_37, %c0_38] : memref<2x8x256xf32, #tpu.memory_space<vmem>>, vector<1x8x256xf32>
    %55 = vector.shape_cast %54 : vector<1x8x256xf32> to vector<8x256xf32>
    %56 = vector.broadcast %45 : vector<8x1xf32> to vector<8x256xf32>
    %57 = arith.mulf %56, %55 : vector<8x256xf32>
    %58 = vector.broadcast %50 : vector<8x1xf32> to vector<8x256xf32>
    %59 = arith.addf %57, %58 : vector<8x256xf32>
    %60 = arith.addf %59, %53 : vector<8x256xf32>
    %cst_39 = arith.constant 0.000000e+00 : f32
    %61 = vector.broadcast %cst_39 : f32 to vector<8x256xf32>
    %62 = arith.maximumf %60, %61 : vector<8x256xf32>
    %c0_40 = arith.constant 0 : index
    %c0_41 = arith.constant 0 : index
    %c0_42 = arith.constant 0 : index
    %63 = vector.load %arg8[%c0_40, %c0_41, %c0_42] : memref<2x8x256xf32, #tpu.memory_space<vmem>>, vector<1x8x256xf32>
    %64 = vector.shape_cast %63 : vector<1x8x256xf32> to vector<8x256xf32>
    %65 = vector.shape_cast %62 : vector<8x256xf32> to vector<1x8x256xf32>
    tpu.vector_store %arg8[%c0_40, %c0_41, %c0_42], %65 {strides = array<i32>} : memref<2x8x256xf32, #tpu.memory_space<vmem>>, vector<1x8x256xf32>,
    %c1_43 = arith.constant 1 : index
    %c0_44 = arith.constant 0 : index
    %c0_45 = arith.constant 0 : index
    %66 = vector.load %arg1[%c1_43, %c0_44, %c0_45] : memref<2x4x256xf32, #tpu.memory_space<vmem>>, vector<1x4x256xf32>
    %67 = vector.shape_cast %66 : vector<1x4x256xf32> to vector<4x256xf32>
    %cst_46 = arith.constant dense<0.000000e+00> : vector<8x256xf32>
    %68 = tpu.matmul %1, %67, %cst_46 {dimension_numbers = #tpu.dot_dimension_numbers<[1], [0], [0], [1], [0, 0, 1, 1], [], []>} : vector<8x4xf32>, vector<4x256xf32>, vector<8x256xf32> -> vector<8x256xf32>
    %c1_47 = arith.constant 1 : index
    %c0_48 = arith.constant 0 : index
    %c0_49 = arith.constant 0 : index
    %69 = vector.load %arg9[%c1_47, %c0_48, %c0_49] : memref<2x8x256xf32, #tpu.memory_space<vmem>>, vector<1x8x256xf32>
    %70 = vector.shape_cast %69 : vector<1x8x256xf32> to vector<8x256xf32>
    %71 = vector.broadcast %45 : vector<8x1xf32> to vector<8x256xf32>
    %72 = arith.mulf %71, %70 : vector<8x256xf32>
    %73 = vector.broadcast %50 : vector<8x1xf32> to vector<8x256xf32>
    %74 = arith.addf %72, %73 : vector<8x256xf32>
    %75 = arith.addf %74, %68 : vector<8x256xf32>
    %cst_50 = arith.constant 0.000000e+00 : f32
    %76 = vector.broadcast %cst_50 : f32 to vector<8x256xf32>
    %77 = arith.maximumf %75, %76 : vector<8x256xf32>
    %c1_51 = arith.constant 1 : index
    %c0_52 = arith.constant 0 : index
    %c0_53 = arith.constant 0 : index
    %78 = vector.load %arg8[%c1_51, %c0_52, %c0_53] : memref<2x8x256xf32, #tpu.memory_space<vmem>>, vector<1x8x256xf32>
    %79 = vector.shape_cast %78 : vector<1x8x256xf32> to vector<8x256xf32>
    %80 = vector.shape_cast %77 : vector<8x256xf32> to vector<1x8x256xf32>
    tpu.vector_store %arg8[%c1_51, %c0_52, %c0_53], %80 {strides = array<i32>} : memref<2x8x256xf32, #tpu.memory_space<vmem>>, vector<1x8x256xf32>,
    return
  }
  func.func @transform_0(%arg0: i32) -> (i32, i32, i32) {
    %c0_i32 = arith.constant 0 : i32
    %c0_i32_0 = arith.constant 0 : i32
    %c0_i32_1 = arith.constant 0 : i32
    %c0_i32_2 = arith.constant 0 : i32
    return %c0_i32, %c0_i32_0, %c0_i32_1 : i32, i32, i32
  }
  func.func @transform_1(%arg0: i32) -> (i32, i32) {
    %c0_i32 = arith.constant 0 : i32
    %c0_i32_0 = arith.constant 0 : i32
    %c0_i32_1 = arith.constant 0 : i32
    return %c0_i32, %c0_i32_0 : i32, i32
  }
  func.func @transform_2(%arg0: i32) -> (i32, i32) {
    %c0_i32 = arith.constant 0 : i32
    %c0_i32_0 = arith.constant 0 : i32
    %c0_i32_1 = arith.constant 0 : i32
    return %c0_i32, %c0_i32_0 : i32, i32
  }
  func.func @transform_3(%arg0: i32) -> (i32, i32) {
    %c0_i32 = arith.constant 0 : i32
    %c0_i32_0 = arith.constant 0 : i32
    %c0_i32_1 = arith.constant 0 : i32
    return %c0_i32, %c0_i32_0 : i32, i32
  }
  func.func @transform_4(%arg0: i32) -> (i32, i32) {
    %c0_i32 = arith.constant 0 : i32
    %c0_i32_0 = arith.constant 0 : i32
    %c0_i32_1 = arith.constant 0 : i32
    return %c0_i32, %c0_i32_0 : i32, i32
  }
  func.func @transform_5(%arg0: i32) -> (i32, i32) {
    %c0_i32 = arith.constant 0 : i32
    %c0_i32_0 = arith.constant 0 : i32
    %c0_i32_1 = arith.constant 0 : i32
    return %c0_i32, %c0_i32_0 : i32, i32
  }
  func.func @transform_6(%arg0: i32) -> (i32, i32) {
    %c0_i32 = arith.constant 0 : i32
    %c0_i32_0 = arith.constant 0 : i32
    %c0_i32_1 = arith.constant 0 : i32
    return %c0_i32, %c0_i32_0 : i32, i32
  }
  func.func @transform_7(%arg0: i32) -> (i32, i32, i32) {
    %c0_i32 = arith.constant 0 : i32
    %c0_i32_0 = arith.constant 0 : i32
    %c0_i32_1 = arith.constant 0 : i32
    %c0_i32_2 = arith.constant 0 : i32
    return %c0_i32, %c0_i32_0, %c0_i32_1 : i32, i32, i32
  }
}

</mosaic_0001>

<bundles_post_ra>
// kernel: tpu_custom_call.1
= control target key start
LH: loop header
LB: loop body
LE: loop exit
PB: predicated region body
PF: predicated region fallthrough
CT: control target
= control target key end

     0   :  { %vm42_vm0 = vcmask 1043456   ;;  %v494_v4 = vmov 0.0   ;;  %s587_s0 = inlined_call_operand.vmem [shape: f32[2,4,256], index: 0, kind: input, shape index: {}]   ;;  %s588_s1 = inlined_call_operand.vmem [shape: f32[8,4], index: 1, kind: input, shape index: {}]   ;;  %s589_s2 = inlined_call_operand.vmem [shape: f32[8,1], index: 2, kind: input, shape index: {}]   ;;  %s590_s3 = inlined_call_operand.vmem [shape: f32[8,1], index: 3, kind: input, shape index: {}]   ;;  %s591_s4 = inlined_call_operand.vmem [shape: f32[8,1], index: 4, kind: input, shape index: {}]   ;;  %s592_s5 = inlined_call_operand.vmem [shape: f32[8,4], index: 5, kind: input, shape index: {}]   ;;  %s593_s6 = inlined_call_operand.vmem [shape: f32[8,1], index: 6, kind: input, shape index: {}]   ;;  %s594_s7 = inlined_call_operand.hbm [shape: f32[2,8,256], index: 7, kind: output, shape index: {}]  }
   0x1   :  { %v30_v0 = vld [vmem:[%s587_s0] sm:$0xff]  ;;  %v448_v1 = vld [vmem:[%s587_s0 + $0x8] sm:$0xff]  ;;  %111 = vmatprep.mubr.f32.mxu0 %v494_v4  ;;  %202 = vmatprep.mubr.f32.mxu1 %v494_v4 }
   0x2   :  { %v37_v2 = vcombine.high %v30_v0, %v30_v0  ;;  %v133_v3 = vcombine.high %v448_v1, %v448_v1 }
   0x3   :  { %12 = vsyncpa [#allocation4], 0  ;;  %v27_v5 = vld [vmem:[%s588_s1] sm:$0xff]  ;;  %vm38_vm1 = vcmask 31744   ;;  %v495_v6 = vmov 0  }
   0x4   :  { %464 = vset.pattern.permute.xlu0 %v495_v6  ;;  %465 = vset.pattern.permute.xlu1 %v495_v6  ;;  %v29_v7 = vld [vmem:[%s589_s2] sm:$0xff] }
   0x5   :  { %445 = vmatprep.subr.msk.mxu0 %vm42_vm0, %v37_v2  ;;  %449 = vmatprep.subr.msk.mxu1 %vm42_vm0, %v133_v3  ;;  %v28_v8 = vld [vmem:[%s592_s5] sm:$0xff] }
   0x6   :  { %446 = vmatpush1.msk.msra.mxu0 %vm42_vm0, %v30_v0  ;;  %450 = vmatpush1.msk.msra.mxu1 %vm42_vm0, %v448_v1  ;;  %v226_v37 = vld [vmem:[%s590_s3] sm:$0xff]  ;;  %s496_s3 = smov [#allocation3]  }
   0x7   :  { %447 = vmatmul.mubr.msk.f32.vlgmr.msra.gmra.mrb[0].mxu0 %vm38_vm1, %v27_v5  ;;  %451 = vmatmul.mubr.msk.f32.vlgmr.msra.gmra.mrb[0].mxu1 %vm38_vm1, %v27_v5  ;;  %v230_v40 = vld [vmem:[%s591_s4] sm:$0xff]  ;;  %s434_s4 = sshll.u32 %s496_s3, 4  ;;  %s435_s4 = int_to_ptr.vmem [resolvable:$true] %s434_s4 }
   0x8   :  { %33 = vperm.xlu0 %464, %v29_v7   ;;  %452 = vmatprep.subr.msk.mxu0 %vm42_vm0, %v37_v2  ;;  %v233_v44 = vld [vmem:[%s593_s6] sm:$0xff]  ;;  %s470_s6 = scalar_lea.vmem %s435_s4, 512  ;;  %p475_p1 = scmp.lt.s32.totalorder %s435_s4, %s435_s4 }
   0x9   :  { %456 = vmatprep.subr.msk.mxu1 %vm42_vm0, %v133_v3  ;;  %453 = vmatpush1.msk.msra.mxu0 %vm42_vm0, %v30_v0  ;;  %p471_p0 = scmp.ne.s32.totalorder %s435_s4, %s470_s6  ;;  %p476_p2 = scmp.lt.s32.totalorder %s470_s6, %s470_s6 }
   0xa   :  { %457 = vmatpush1.msk.msra.mxu1 %vm42_vm0, %v448_v1  ;;  %309 = vmatprep.mubr.f32.mxu0 %v494_v4 }
   0xb   :  { %409 = vmatprep.mubr.f32.mxu1 %v494_v4  ;;  %454 = vmatmul.mubr.msk.f32.vlgmr.msra.gmra.mrb[2].mxu0 %vm38_vm1, %v28_v8  ;;  %p477_p3 = por %p476_p2, %p475_p1 }
   0xc   :  { %458 = vmatmul.mubr.msk.f32.vlgmr.msra.gmra.mrb[2].mxu1 %vm38_vm1, %v28_v8 }
   0xd   :  { %p478_p4 = pnand %p477_p3, %p471_p0 }
  0x87   :  { %v34_v9 = vpop.permute.xlu0 %33 }
  0xda   :  { %v113_v10 = vpop.f32.mrb[0].mxu0  ;;  %v204_v11 = vpop.f32.mrb[0].mxu1 }
  0xdb   :  { %v114_v12 = vadd.f32 %v113_v10, %v34_v9  ;;  %v205_v13 = vadd.f32 %v204_v11, %v34_v9  ;;  %v115_v14 = vpop.f32.mrb[1].mxu0  ;;  %v206_v15 = vpop.f32.mrb[1].mxu1 }
  0xdc   :  { %v116_v16 = vadd.f32 %v115_v14, %v34_v9  ;;  %v207_v17 = vadd.f32 %v206_v15, %v34_v9 }
  0xdd   :  { %v124_v20 = vmul.f32 %v114_v12, %v114_v12  ;;  %v216_v23 = vmul.f32 %v205_v13, %v205_v13 }
  0xde   :  { %v212_v18 = vadd.f32 %v207_v17, %v205_v13  ;;  %v120_v19 = vadd.f32 %v116_v16, %v114_v12  ;;  %v125_v21 = vmul.f32 %v116_v16, %v116_v16  ;;  %v217_v24 = vmul.f32 %v207_v17, %v207_v17  ;;  %v311_v41 = vpop.f32.mrb[2].mxu0 }
  0xdf   :  { %v411_v42 = vpop.f32.mrb[2].mxu1  ;;  %v313_v47 = vpop.f32.mrb[3].mxu0 }
  0xe0   :  { %213 = vadd.xlane.f32.xlu1 %v212_v18  ;;  %121 = vadd.xlane.f32.xlu0 %v120_v19  ;;  %v126_v22 = vadd.f32 %v125_v21, %v124_v20  ;;  %v218_v25 = vadd.f32 %v217_v24, %v216_v23  ;;  %v413_v48 = vpop.f32.mrb[3].mxu1 }
  0xe4   :  { %127 = vadd.xlane.f32.xlu1 %v126_v22 }
  0xe8   :  { %219 = vadd.xlane.f32.xlu1 %v218_v25 }
 0x16d   :  { %v214_v26 = vpop.xlane.xlu1 %213  ;;  %v122_v27 = vpop.xlane.xlu0 %121 }
 0x16e   :  { %v215_v28 = vadd.f32 %v214_v26, %v122_v27 }
 0x170   :  { %v222_v30 = vmul.f32 0.001953125, %v215_v28 }
 0x171   :  { %v128_v29 = vpop.xlane.xlu1 %127 }
 0x172   :  { %v224_v33 = vmul.f32 %v222_v30, %v222_v30 }
 0x175   :  { %v220_v31 = vpop.xlane.xlu1 %219 }
 0x176   :  { %v221_v32 = vadd.f32 %v220_v31, %v128_v29 }
 0x178   :  { %v223_v34 = vmul.f32 0.001953125, %v221_v32 }
 0x17a   :  { %v225_v35 = vsub.f32 %v223_v34, %v224_v33 }
 0x17c   :  { %v227_v36 = vadd.f32 1e-05, %v225_v35 }
 0x17e   :  { %468 = vrsqrt.f32 %v227_v36 }
 0x188   :  { %v469_v38 = vpop.eup %468 }
 0x189   :  { %v229_v39 = vmul.f32 %v469_v38, %v226_v37 }
 0x18b   :  { %320 = vperm.xlu1 %465, %v229_v39   ;;  %v231_v43 = vmul.f32 %v229_v39, %v222_v30 }
 0x18d   :  { %v232_v45 = vsub.f32 %v230_v40, %v231_v43 }
 0x18f   :  { %v234_v46 = vadd.f32 %v233_v44, %v232_v45 }
 0x191   :  { %327 = vperm.xlu1 %465, %v234_v46  }
 0x20a   :  { %v321_v49 = vpop.permute.xlu1 %320 }
 0x20b   :  { %v323_v50 = vmul.f32 %v321_v49, %v114_v12  ;;  %v418_v51 = vmul.f32 %v321_v49, %v205_v13  ;;  %v324_v52 = vmul.f32 %v321_v49, %v116_v16  ;;  %v419_v53 = vmul.f32 %v321_v49, %v207_v17 }
 0x210   :  { %v328_v54 = vpop.permute.xlu1 %327 }
 0x211   :  { %v330_v55 = vadd.f32 %v328_v54, %v323_v50  ;;  %v420_v56 = vadd.f32 %v418_v51, %v328_v54  ;;  %v331_v57 = vadd.f32 %v328_v54, %v324_v52  ;;  %v421_v58 = vadd.f32 %v419_v53, %v328_v54 }
 0x213   :  { %v332_v59 = vadd.f32 %v330_v55, %v311_v41  ;;  %v422_v60 = vadd.f32 %v420_v56, %v411_v42  ;;  %v333_v61 = vadd.f32 %v331_v57, %v313_v47  ;;  %v423_v62 = vadd.f32 %v421_v58, %v413_v48 }
 0x215   :  { %v334_v63 = vmax.f32 %v332_v59, 0.0  ;;  %v424_v0 = vmax.f32 %v422_v60, 0.0  ;;  %v335_v1 = vmax.f32 %v333_v61, 0.0  ;;  %v425_v2 = vmax.f32 %v423_v62, 0.0 }
 0x217   :  { %336 = vst [vmem:[#allocation3] sm:$0xff] %v334_v63  ;;  %427 = vst [vmem:[#allocation3 + $0x10] sm:$0xff] %v424_v0 }
 0x218   :  { %337 = vst [vmem:[#allocation3 + $0x8] sm:$0xff] %v335_v1  ;;  %428 = vst [vmem:[#allocation3 + $0x18] sm:$0xff] %v425_v2 }
 0x219   :  { %481 = shalt.err (!%p478_p4)
}
 0x21a   :  { %s482_s15 = scalar_lea.hbm %s594_s7, 512 }
 0x21b   :  { %p483_p5 = scmp.ne.s32.totalorder %s594_s7, %s482_s15  ;;  %p486_p6 = scmp.lt.u32.totalorder %s482_s15, %s594_s7 }
 0x21d   :  { %p488_p7 = pnand %p486_p6, %p483_p5 }
 0x21f   :  { %491 = shalt.err (!%p488_p7)
}
 0x220   :  { %s497_s20 = smov 256   ;;  %s498_s21 = smov 16  }
 0x221   :  { %440 = dma.vmem_to_hbm [thread:$0]  %s435_s4, 512, %s594_s7, [#allocation4], %s497_s20, %s497_s20, %s498_s21  }
 0x222   :  { %492 = dma.done.wait [#allocation4], 512  }
 0x223   :  { %493 = vsyncadd [#allocation4], 4294966784 }
 0x224   :  { %444 = vsyncpa [#allocation4], 1 }

</bundles_post_ra>
